<compile_context>
chip_gen: v5e
topology: v5e:2x2
jax: 0.10.0
libtpu: 0.0.40
codegen_flags: <defaults>
</compile_context>

<pallas_src>
import functools
import math

import jax
import jax.numpy as jnp
from jax import lax
from jax.experimental import pallas as pl
from jax.experimental.pallas import tpu as pltpu

S_SCALE = 30.0
M_MARGIN = 0.4
LS_EPS = 0.1          # torchreid CrossEntropyLoss label-smoothing epsilon
NORM_EPS = 1e-12      # F.normalize eps: x / max(||x||, eps)


# -----------------------------------------------------------------------------
# Tile / VMEM configuration (per-generation).
# -----------------------------------------------------------------------------
def _round_up(x, m):
    return ((x + m - 1) // m) * m


def _device_kind():
    try:
        return jax.devices()[0].device_kind.lower()
    except Exception:
        return ""


def _vmem_estimate(tn, tc, d):
    lane = 128
    x_blocks = 2 * tn * d * 4            # f32 input, double-buffered
    w_blocks = 2 * d * tc * 2            # bf16 weight, double-buffered
    wsum_blk = 2 * max(d, lane) * 4
    lbl_blk = 2 * tn * lane * 4          # (tn, 1) int32 block, lane-padded
    out_blk = 2 * tn * lane * 4
    xn_scr = tn * d * 2                  # bf16 normalized-x scratch
    stats = 2 * tn * lane * 4
    temps = 4 * tn * tc * 4              # cosine / logits / exp / one-hot tiles
    return (x_blocks + w_blocks + wsum_blk + lbl_blk + out_blk
            + xn_scr + stats + temps)


def _choose_config(n, c, d, tile_n, tile_c):
    kind = _device_kind()
    is_v5 = "v5" in kind
    is_v7 = ("v7" in kind) or ("7x" in kind)
    # v5e/v6e have 128 MiB physical VMEM -> raise the scoped limit.
    # v7x (64 MiB physical) and unknown chips keep the 32 MiB scoped default.
    vmem_limit = 96 * 2**20 if (is_v5 or "v6" in kind) else 32 * 2**20
    budget = (vmem_limit * 3) // 4
    lane_align = 128 if is_v5 else 256   # MXU: 4x128^2 on v5e, 2x256^2 on v6e/v7x

    # tile_n is the arithmetic-intensity knob (weight HBM re-reads ~ N/tn):
    # ridge ~240 flop/B on v5e -> tn~256; ~620-655 on v6e / v7x -> tn~512.
    tn = min(256 if is_v5 else 512, _round_up(n, 8))
    tc = min(512 if is_v7 else 1024, _round_up(c, lane_align))
    if is_v7 and n > 8 and _round_up(n, tn) // tn < 2:
        tn = _round_up((n + 1) // 2, 8)  # keep >=2 batch tiles -> both TCs busy
    # Fit the VMEM budget: shrink the class tile first (weight reuse ~ tn).
    while _vmem_estimate(tn, tc, d) > budget and tc > 128:
        tc = max(128, tc - lane_align)
    while _vmem_estimate(tn, tc, d) > budget and tn > 64:
        tn -= 64

    if tile_n is not None:
        tn = max(8, _round_up(tile_n, 8))
    if tile_c is not None:
        tc = max(128, _round_up(tile_c, 128))
    return tn, tc, vmem_limit, budget


def _prep_tile(c_pad, d, tc, budget):
    # f32 input + bf16 output double-buffers ~ 12*d*t bytes; t must divide c_pad
    # (c_pad is always a multiple of 128).
    t = min(tc, c_pad)
    while t > 128:
        if c_pad % t == 0 and 12 * d * t <= budget:
            return t
        t -= 128
    return 128


# -----------------------------------------------------------------------------
# Prep kernel: column-normalize W^T (i.e. row-normalize W) once, emit bf16 in
# the (D, C) layout the MXU wants, plus colsum(w_n) for the smoothing term.
# -----------------------------------------------------------------------------
def _prep_weight_kernel(wt_ref, wnt_ref, wsum_ref):
    w = wt_ref[...].astype(jnp.float32)                                  # (d, tc)
    inv = lax.rsqrt(jnp.maximum(jnp.sum(w * w, axis=0, keepdims=True),
                                NORM_EPS * NORM_EPS))                    # (1, tc)
    wn_b = (w * inv).astype(jnp.bfloat16)
    wnt_ref[...] = wn_b

    @pl.when(pl.program_id(0) == 0)
    def _init():
        wsum_ref[...] = jnp.zeros_like(wsum_ref)

    # Sum over classes of the *bf16* values the MXU will consume.
    wsum_ref[...] += jnp.sum(wn_b.astype(jnp.float32), axis=1, keepdims=True)


def _prep_weight(w_t, tile_c, vmem_limit):
    d, c_pad = w_t.shape
    return pl.pallas_call(
        _prep_weight_kernel,
        out_shape=(jax.ShapeDtypeStruct((d, c_pad), jnp.bfloat16),
                   jax.ShapeDtypeStruct((d, 1), jnp.float32)),
        grid_spec=pltpu.PrefetchScalarGridSpec(
            num_scalar_prefetch=0,
            grid=(c_pad // tile_c,),
            in_specs=[pl.BlockSpec((d, tile_c), lambda j: (0, j))],
            out_specs=[pl.BlockSpec((d, tile_c), lambda j: (0, j)),
                       pl.BlockSpec((d, 1), lambda j: (0, 0))],
        ),
        compiler_params=pltpu.CompilerParams(
            dimension_semantics=("arbitrary",),          # wsum is a reduction
            vmem_limit_bytes=vmem_limit),
    )(w_t)


# -----------------------------------------------------------------------------
# Main kernel: grid = (N_pad//tn, C_pad//tc), class axis innermost, fixed-shift
# streaming softmax over class tiles.
# -----------------------------------------------------------------------------
def _cosface_kernel(x_ref, wt_ref, wsum_ref, lbl_ref, out_ref,
                    xn_scr, l_scr, t_scr,
                    *, tile_c, num_classes, mask_classes):
    j = pl.program_id(1)

    @pl.when(j == 0)
    def _init():
        # Normalize this x tile once per batch tile (f32 math, rsqrt -> EUP),
        # cache it as bf16 so the MXU LHS needs no per-class-tile cast.
        x = x_ref[...].astype(jnp.float32)
        inv = lax.rsqrt(jnp.maximum(jnp.sum(x * x, axis=1, keepdims=True),
                                    NORM_EPS * NORM_EPS))
        xn_scr[...] = (x * inv).astype(jnp.bfloat16)
        l_scr[...] = jnp.zeros_like(l_scr)
        t_scr[...] = jnp.zeros_like(t_scr)

    # cosine = x_n @ w_n^T with the weight pre-transposed to (d, tc): native
    # (m,k)x(k,n) feed of the MXU, bf16 operands, f32 accumulation.
    cosine = lax.dot_general(
        xn_scr[...], wt_ref[...],
        dimension_numbers=(((1,), (0,)), ((), ())),
        preferred_element_type=jnp.float32)                        # (tn, tc) f32

    tn, tc = cosine.shape
    col = lax.broadcasted_iota(jnp.int32, (tn, tc), 1) + j * tile_c
    # NOTE: labels are assumed in-range [0, num_classes); out-of-range labels
    # silently give a wrong (not erroring) loss.
    is_tgt = (col == lbl_ref[...]).astype(jnp.float32)             # (tn, tc)

    # Fused margin + scale: s*(one_hot*(cos-m) + (1-one_hot)*cos)
    #                     = s*cos - (s*m)*one_hot
    logits = S_SCALE * cosine - (S_SCALE * M_MARGIN) * is_tgt

    # Fixed-shift softmax: logits <= s*cos <= ~S, and the minimum exp argument
    # is ~ -S*(2+m) which is comfortably representable in f32, so no running
    # max / rescale is needed.
    p = jnp.exp(logits - S_SCALE)
    if mask_classes:  # static: only when C was padded up to a tile multiple
        p = jnp.where(col < num_classes, p, 0.0)
    l_scr[...] += jnp.sum(p, axis=1, keepdims=True)
    # Each row's label column lives in exactly one class tile -> exact.
    t_scr[...] += jnp.sum(is_tgt * logits, axis=1, keepdims=True)

    @pl.when(j == pl.num_programs(1) - 1)
    def _finalize():
        lse = S_SCALE + jnp.log(l_scr[...])
        # sum_j logits[i, j] = S * (x_n[i] . sum_j w_n[j]) - S*m  (one-hot sums
        # to 1 per row), computed once per batch tile instead of per class tile.
        cos_sum = jnp.sum(xn_scr[...].astype(jnp.float32) * wsum_ref[...],
                          axis=1, keepdims=True)
        sum_logits = S_SCALE * cos_sum - (S_SCALE * M_MARGIN)
        # Label-smoothed CE without materializing a (tn, tc) targets tensor.
        out_ref[...] = (lse
                        - (1.0 - LS_EPS) * t_scr[...]
                        - (LS_EPS / num_classes) * sum_logits)


def cosface_loss(x, weight, labels, *, tile_n=None, tile_c=None):
    n, d = x.shape
    c, d_w = weight.shape
    assert d == d_w, (x.shape, weight.shape)

    tn, tc, vmem_limit, budget = _choose_config(n, c, d, tile_n, tile_c)
    n_pad = _round_up(n, tn)
    c_pad = _round_up(c, tc)

    # Zero-pad ragged batch / class dims up to tile multiples (pad rows are
    # dropped before the mean; pad classes are masked inside the kernel).
    x_p = x if n_pad == n else jnp.pad(x, ((0, n_pad - n), (0, 0)))
    lbl = jnp.pad(labels.astype(jnp.int32), (0, n_pad - n)).reshape(n_pad, 1)

    # Transpose W once in XLA (cheap, once per call), pad classes, then
    # normalize + colsum in a one-shot prep kernel reused across all N tiles.
    w_t = jnp.transpose(weight)                                   # (d, c) f32
    if c_pad != c:
        w_t = jnp.pad(w_t, ((0, 0), (0, c_pad - c)))
    tcp = _prep_tile(c_pad, d, tc, budget)
    w_nt, w_sum = _prep_weight(w_t, tcp, vmem_limit)   # (d,c_pad) bf16, (d,1) f32
    w_sum_row = w_sum.reshape(1, d)

    kernel = functools.partial(_cosface_kernel, tile_c=tc, num_classes=c,
                               mask_classes=(c_pad != c))

    per_sample = pl.pallas_call(
        kernel,
        out_shape=jax.ShapeDtypeStruct((n_pad, 1), jnp.float32),
        grid_spec=pltpu.PrefetchScalarGridSpec(
            num_scalar_prefetch=0,
            grid=(n_pad // tn, c_pad // tc),
            in_specs=[
                pl.BlockSpec((tn, d), lambda i, j: (i, 0)),       # x
                # TODO(synk): add pipeline_mode=pl.Buffered(3) here if the weight
                # DMA is latency-exposed for tiny D (per-step block < ~256 KiB).
                pl.BlockSpec((d, tc), lambda i, j: (0, j)),       # w_n^T (bf16)
                pl.BlockSpec((1, d), lambda i, j: (0, 0)),        # colsum(w_n)
                pl.BlockSpec((tn, 1), lambda i, j: (i, 0)),       # labels
            ],
            out_specs=pl.BlockSpec((tn, 1), lambda i, j: (i, 0)),
            scratch_shapes=[
                pltpu.VMEM((tn, d), jnp.bfloat16),   # normalized x tile (bf16)
                pltpu.VMEM((tn, 1), jnp.float32),    # running sum exp(logit - S)
                pltpu.VMEM((tn, 1), jnp.float32),    # target logit
            ]),
        compiler_params=pltpu.CompilerParams(
            dimension_semantics=("parallel", "arbitrary"),
            vmem_limit_bytes=vmem_limit),
    )(x_p, w_nt, w_sum_row, lbl)

    # Final batch mean over the real (unpadded) rows: tiny reduction in XLA.
    return jnp.sum(per_sample[:n, 0]) / n


# -----------------------------------------------------------------------------
# Pure-JAX reference mirroring the module (bf16 MXU inputs, f32 accumulation).
# -----------------------------------------------------------------------------
def reference_loss(x, weight, labels):
    x = x.astype(jnp.float32)
    w = weight.astype(jnp.float32)
    x_n = x * lax.rsqrt(jnp.maximum(jnp.sum(x * x, axis=1, keepdims=True),
                                    NORM_EPS * NORM_EPS))
    w_n = w * lax.rsqrt(jnp.maximum(jnp.sum(w * w, axis=1, keepdims=True),
                                    NORM_EPS * NORM_EPS))
    cosine = jnp.dot(x_n.astype(jnp.bfloat16), w_n.astype(jnp.bfloat16).T,
                     preferred_element_type=jnp.float32)
    c = w.shape[0]
    one_hot = jax.nn.one_hot(labels, c, dtype=jnp.float32)
    logits = S_SCALE * cosine - (S_SCALE * M_MARGIN) * one_hot
    log_probs = jax.nn.log_softmax(logits, axis=1)
    targets = (1.0 - LS_EPS) * one_hot + LS_EPS / c
    return jnp.sum(-targets * log_probs) / x.shape[0]


if __name__ == "__main__":
    key = jax.random.PRNGKey(0)
    k_x, k_w, k_l, k_x2, k_w2, k_l2 = jax.random.split(key, 6)

    # --- Test 1: aligned shapes, forced multi-tile grid (2 batch x 2 class). ---
    N, D, C = 16, 128, 512
    x = jax.random.normal(k_x, (N, D), dtype=jnp.float32)
    bound = math.sqrt(6.0 / (D + C))                 # xavier_uniform_
    w = jax.random.uniform(k_w, (C, D), minval=-bound, maxval=bound,
                           dtype=jnp.float32)
    y = jax.random.randint(k_l, (N,), 0, C, dtype=jnp.int32)

    loss = cosface_loss(x, w, y, tile_n=8, tile_c=256)
    jax.block_until_ready(loss)
    ref = reference_loss(x, w, y)
    assert jnp.allclose(loss, ref, atol=3e-3, rtol=3e-3), (loss, ref)

    # --- Test 2: ragged N and C -> exercises row padding + class masking. ---
    N2, D2, C2 = 12, 128, 300
    x2 = jax.random.normal(k_x2, (N2, D2), dtype=jnp.float32)
    bound2 = math.sqrt(6.0 / (D2 + C2))
    w2 = jax.random.uniform(k_w2, (C2, D2), minval=-bound2, maxval=bound2,
                            dtype=jnp.float32)
    y2 = jax.random.randint(k_l2, (N2,), 0, C2, dtype=jnp.int32)

    loss2 = cosface_loss(x2, w2, y2, tile_n=8, tile_c=128)
    jax.block_until_ready(loss2)
    ref2 = reference_loss(x2, w2, y2)
    assert jnp.allclose(loss2, ref2, atol=3e-3, rtol=3e-3), (loss2, ref2)

    # --- Test 3: automatic, device-kind-aware tile selection. ---
    loss3 = cosface_loss(x, w, y)
    jax.block_until_ready(loss3)
    assert jnp.allclose(loss3, ref, atol=3e-3, rtol=3e-3), (loss3, ref)

    print("KERNEL_OK")
</pallas_src>

<mosaic_0001>
module attributes {stable_mosaic.version = 11 : i64} {
  func.func @_prep_weight_kernel(%arg0: i32, %arg1: memref<128x256xf32, #tpu.memory_space<vmem>>, %arg2: memref<128x256xbf16, #tpu.memory_space<vmem>>, %arg3: memref<128x1xf32, #tpu.memory_space<vmem>>) attributes {dimension_semantics = [#tpu.dimension_semantics<arbitrary>], iteration_bounds = array<i64: 2>, scalar_prefetch = 0 : i64, scratch_operands = 0 : i64, tpu.core_type = #tpu.core_type<tc>, window_params = [{transform_indices = @transform_0, window_bounds = array<i64: 128, 256>}, {transform_indices = @transform_1, window_bounds = array<i64: 128, 256>}, {pipeline_mode = #tpu.pipeline_mode<synchronous>, transform_indices = @transform_2, window_bounds = array<i64: 128, 1>}]} {
    %c0 = arith.constant 0 : index
    %c0_0 = arith.constant 0 : index
    %0 = vector.load %arg1[%c0, %c0_0] : memref<128x256xf32, #tpu.memory_space<vmem>>, vector<128x256xf32>
    %1 = arith.mulf %0, %0 : vector<128x256xf32>
    %cst = arith.constant dense<0.000000e+00> : vector<256xf32>
    %2 = vector.multi_reduction <add>, %1, %cst [0] : vector<128x256xf32> to vector<256xf32>
    %3 = vector.shape_cast %2 : vector<256xf32> to vector<1x256xf32>
    %cst_1 = arith.constant 1.000000e-24 : f32
    %4 = vector.broadcast %cst_1 : f32 to vector<1x256xf32>
    %5 = arith.maximumf %3, %4 : vector<1x256xf32>
    %6 = math.rsqrt %5 : vector<1x256xf32>
    %7 = vector.broadcast %6 : vector<1x256xf32> to vector<128x256xf32>
    %8 = arith.mulf %0, %7 : vector<128x256xf32>
    %9 = arith.truncf %8 : vector<128x256xf32> to vector<128x256xbf16>
    %c0_2 = arith.constant 0 : index
    %c0_3 = arith.constant 0 : index
    %10 = vector.load %arg2[%c0_2, %c0_3] : memref<128x256xbf16, #tpu.memory_space<vmem>>, vector<128x256xbf16>
    tpu.vector_store %arg2[%c0_2, %c0_3], %9 {strides = array<i32>} : memref<128x256xbf16, #tpu.memory_space<vmem>>, vector<128x256xbf16>,
    %c0_i32 = arith.constant 0 : i32
    %11 = arith.cmpi eq, %arg0, %c0_i32 : i32
    %12 = arith.extui %11 : i1 to i32
    %c0_i32_4 = arith.constant 0 : i32
    %13 = arith.cmpi ne, %12, %c0_i32_4 : i32
    scf.if %13 {
      %cst_10 = arith.constant 0.000000e+00 : f32
      %20 = vector.broadcast %cst_10 : f32 to vector<128x1xf32>
      %c0_11 = arith.constant 0 : index
      %c0_12 = arith.constant 0 : index
      %21 = vector.load %arg3[%c0_11, %c0_12] : memref<128x1xf32, #tpu.memory_space<vmem>>, vector<128x1xf32>
      tpu.vector_store %arg3[%c0_11, %c0_12], %20 {strides = array<i32>} : memref<128x1xf32, #tpu.memory_space<vmem>>, vector<128x1xf32>,
    } else {
    }
    %c0_5 = arith.constant 0 : index
    %c0_6 = arith.constant 0 : index
    %14 = vector.load %arg3[%c0_5, %c0_6] : memref<128x1xf32, #tpu.memory_space<vmem>>, vector<128x1xf32>
    %15 = arith.extf %9 : vector<128x256xbf16> to vector<128x256xf32>
    %cst_7 = arith.constant dense<0.000000e+00> : vector<128xf32>
    %16 = vector.multi_reduction <add>, %15, %cst_7 [1] : vector<128x256xf32> to vector<128xf32>
    %17 = vector.shape_cast %16 : vector<128xf32> to vector<128x1xf32>
    %18 = arith.addf %14, %17 : vector<128x1xf32>
    %c0_8 = arith.constant 0 : index
    %c0_9 = arith.constant 0 : index
    %19 = vector.load %arg3[%c0_8, %c0_9] : memref<128x1xf32, #tpu.memory_space<vmem>>, vector<128x1xf32>
    tpu.vector_store %arg3[%c0_8, %c0_9], %18 {strides = array<i32>} : memref<128x1xf32, #tpu.memory_space<vmem>>, vector<128x1xf32>,
    return
  }
  func.func @transform_0(%arg0: i32) -> (i32, i32) {
    %c0_i32 = arith.constant 0 : i32
    %c0_i32_0 = arith.constant 0 : i32
    return %c0_i32, %arg0 : i32, i32
  }
  func.func @transform_1(%arg0: i32) -> (i32, i32) {
    %c0_i32 = arith.constant 0 : i32
    %c0_i32_0 = arith.constant 0 : i32
    return %c0_i32, %arg0 : i32, i32
  }
  func.func @transform_2(%arg0: i32) -> (i32, i32) {
    %c0_i32 = arith.constant 0 : i32
    %c0_i32_0 = arith.constant 0 : i32
    %c0_i32_1 = arith.constant 0 : i32
    return %c0_i32, %c0_i32_0 : i32, i32
  }
}

</mosaic_0001>

<bundles_post_ra>
// kernel: tpu_custom_call.1
= control target key start
LH: loop header
LB: loop body
LE: loop exit
PB: predicated region body
PF: predicated region fallthrough
CT: control target
= control target key end

     0   :  { %8 = vsyncpa [#allocation3], 0  ;;  %s1391_s0 = inlined_call_operand.hbm [shape: f32[128,512], index: 0, kind: input, shape index: {}]   ;;  %s1392_s1 = inlined_call_operand.hbm [shape: bf16[128,512], index: 1, kind: output, shape index: {0}]   ;;  %s1393_s2 = inlined_call_operand.vmem [shape: f32[128,1], index: 2, kind: output, shape index: {1}]  }
   0x1   :  { %10 = vsyncpa [#allocation3 + $0x1], 0 }
   0x2   :  { %11 = vsyncpa [#allocation4], 0 }
   0x3   :  { %13 = vsyncpa [#allocation4 + $0x1], 0  ;;  %s795_s9 = smov 0   ;;  %s797_s10 = smov 0  }
   0x4   :  { %s799_s11 = smov 0   ;;  %s801_s12 = smov 0  }
   0x5 LB: > { %s816_s13 = sadd.s32 4294967295, %s771_s12   ;;  %s601_s14 = sadd.s32 4294967294, %s771_s12   ;;  %s771_s12 = sphi %s801_s12, %s1402_s12   ;;  %s767_s11 = sphi %s799_s11, %s1401_s11   ;;  %s763_s10 = sphi %s797_s10, %s1400_s10   ;;  %s759_s9 = sphi %s795_s9, %s1399_s9  }
   0x6   : > { %s820_s15 = sadd.s32 1, %s771_s12   ;;  %s26_s16 = sadd.s32 1, %s767_s11 }
   0x7   : > { %s23_s17 = ssub.s32 %s771_s12, %s820_s15  ;;  %p33_p0 = scmp.ne.s32.totalorder %s767_s11, %s763_s10 }
   0x8   : > { %p24_p1 = scmp.eq.s32.totalorder %s23_s17, 0  ;;  %p34_p2 = scmp.eq.s32.totalorder %s771_s12, 0 }
   0x9   : > { %p39_p3 = scmp.ne.s32.totalorder %s763_s10, %s759_s9  ;;  %p40_p4 = scmp.eq.s32.totalorder %s816_s13, 0 }
   0xa   : > { %s832_s18 = scalar_select %p24_p1, %s767_s11, %s26_s16  }
   0xb   : > { %p834_p5 = por %p34_p2, %p33_p0  ;;  %p838_p6 = por %p40_p4, %p39_p3 }
   0xc   : > { %p63_p7 = scmp.eq.s32.totalorder %s816_s13, 1  ;;  %p69_p8 = scmp.eq.s32.totalorder %s601_s14, 1 }
   0xd   : > { %p603_p9 = scmp.ge.s32.totalorder %s771_s12, 2  ;;  %p630_p10 = scmp.lt.s32.totalorder %s771_s12, 2 }
   0xe   : > { %p845_p11 = por %p63_p7, %p33_p0  ;;  %p849_p12 = por %p69_p8, %p39_p3 }
   0xf   : > { %s110_s23 = sand.u32 1, %s767_s11   ;;  %s616_s24 = sshll.u32 %s771_s12, 4 }
  0x10   : > { %s604_s25 = sshll.u32 %s110_s23, 8  ;;  %s119_s28 = scalar_lea.hbm %s1391_s0, %s616_s24 }
  0x11   : > { %s120_s29 = sshll.u32 %s119_s28, 4  ;;  %s114_s30 = scalar_lea.vmem [#allocation2], %s604_s25  ;;  %s121_s29 = int_to_ptr.hbm [resolvable:$true] %s120_s29 }
  0x12   : > { %s122_s3 = sshll.u32 %s114_s30, 4  ;;  %p860_p13 = pnand %p630_p10, %p834_p5  ;;  %s123_s3 = int_to_ptr.vmem [resolvable:$true] %s122_s3 }
  0x13   : > { %p607_p0 = scmp.ge.s32.totalorder %s771_s12, 1  ;;  %s111_s5 = scalar_lea.sflag [#allocation3], %s110_s23 }
  0x14   : > { %s675_s6 = sshra.s32 %s121_s29, 4  ;;  %p679_p2 = pneg %p860_p13  ;;  %s676_s6 = int_to_ptr.hbm [resolvable:$true] %s675_s6 }
  0x15   : > { %s677_s7 = scalar_lea.hbm %s676_s6, 256  ;;  %s682_s16 = scalar_lea.hbm %s1391_s0, 512 }
  0x16   : > { %p678_p1 = scmp.ne.s32.totalorder %s676_s6, %s677_s7  ;;  %p683_p5 = scmp.lt.s32.totalorder %s676_s6, %s1391_s0 }
  0x17   : > { %p684_p7 = scmp.lt.s32.totalorder %s682_s16, %s677_s7 }
  0x18   : > { %p680_p3 = pnand %p679_p2, %p678_p1 }
  0x19   : > { %p685_p8 = por %p684_p7, %p683_p5 }
  0x1a   : > { %p681_p4 = pneg %p680_p3 }
  0x1c   : > { %p686_p10 = pnand %p685_p8, %p681_p4 }
  0x1e   : > { %689 = shalt.err (!%p686_p10)
}
  0x1f   : > { %s773_s23 = smov 512   ;;  %s774_s24 = smov 256  }
  0x20   : > { %s775_s25 = smov 16   ;;  %p130_p1 = scmp.lt.s32.totalorder %s771_s12, 3 }
  0x21   : > { %625 = dma.hbm_to_vmem [thread:$0]  (!%p860_p13), %s121_s29, 4096, %s123_s3, %s111_s5, %s773_s23, %s774_s24, %s775_s25  }
  0x22   : > { %p131_p2 = pnand %p607_p0, %p130_p1 }
  0x23   : > { %s879_s26 = sand.u32 (!%p131_p2), 1, %s763_s10  }
  0x24   : > { %134 = sbr.rel (%p131_p2) target bundleno = 309 (0x135), region = 24  ;;  %s608_s27 = sshll.u32 (!%p131_p2), %s879_s26, 8 }
  0x25   : > { %s137_s28 = scalar_lea.sflag (!%p131_p2), [#allocation3], %s879_s26  ;;  %s883_s30 = scalar_lea.vmem (!%p131_p2), [#allocation2], %s608_s27 }
  0x29   : > { %750 = dma.done.wait (%p838_p6), %s137_s28, 4096  }
  0x2a   : > { %752 = vsyncadd (%p838_p6), %s137_s28, 4294963200  ;;  %v890_v0 = vld [vmem:[%s883_s30] sm:$0xff]  ;;  %v893_v1 = vld [vmem:[%s883_s30 + $0x8] sm:$0xff]  ;;  %s609_s20 = sshll.u32 %s879_s26, 7  ;;  %p610_p6 = scmp.ne.s32.totalorder %s816_s13, 0 }
  0x2b   : > { %v896_v2 = vld [vmem:[%s883_s30 + $0x10] sm:$0xff]  ;;  %v899_v3 = vld [vmem:[%s883_s30 + $0x18] sm:$0xff]  ;;  %v902_v4 = vld [vmem:[%s883_s30 + $0x20] sm:$0xff]  ;;  %v196_v6 = vmul.f32 %v890_v0, %v890_v0  ;;  %v197_v7 = vmul.f32 %v893_v1, %v893_v1  ;;  %s1072_s29 = scalar_lea.vmem [#allocation5], %s609_s20 }
  0x2c   : > { %v905_v5 = vld [vmem:[%s883_s30 + $0x28] sm:$0xff]  ;;  %v198_v8 = vmul.f32 %v896_v2, %v896_v2  ;;  %v914_v9 = vld [vmem:[%s883_s30 + $0x30] sm:$0xff]  ;;  %v917_v10 = vld [vmem:[%s883_s30 + $0x38] sm:$0xff]  ;;  %v199_v12 = vmul.f32 %v899_v3, %v899_v3  ;;  %v200_v13 = vmul.f32 %v902_v4, %v902_v4 }
  0x2d   : > { %v920_v11 = vld [vmem:[%s883_s30 + $0x40] sm:$0xff]  ;;  %v201_v14 = vmul.f32 %v905_v5, %v905_v5  ;;  %v929_v15 = vld [vmem:[%s883_s30 + $0x48] sm:$0xff]  ;;  %v202_v16 = vmul.f32 %v914_v9, %v914_v9  ;;  %v934_v18 = vld [vmem:[%s883_s30 + $0x50] sm:$0xff]  ;;  %v203_v19 = vmul.f32 %v917_v10, %v917_v10 }
  0x2e   : > { %v228_v17 = vadd.f32 %v198_v8, %v196_v6  ;;  %v249_v20 = vadd.f32 %v199_v12, %v197_v7  ;;  %v939_v21 = vld [vmem:[%s883_s30 + $0x58] sm:$0xff]  ;;  %v204_v22 = vmul.f32 %v920_v11, %v920_v11  ;;  %v944_v24 = vld [vmem:[%s883_s30 + $0x60] sm:$0xff]  ;;  %v205_v25 = vmul.f32 %v929_v15, %v929_v15  ;;  %v949_v27 = vld [vmem:[%s883_s30 + $0x68] sm:$0xff] }
  0x2f   : > { %v206_v28 = vmul.f32 %v934_v18, %v934_v18  ;;  %v954_v30 = vld [vmem:[%s883_s30 + $0x70] sm:$0xff]  ;;  %v207_v31 = vmul.f32 %v939_v21, %v939_v21  ;;  %v959_v33 = vld [vmem:[%s883_s30 + $0x78] sm:$0xff]  ;;  %v208_v34 = vmul.f32 %v944_v24, %v944_v24  ;;  %v964_v36 = vld [vmem:[%s883_s30 + $0x80] sm:$0xff]  ;;  %v209_v37 = vmul.f32 %v949_v27, %v949_v27 }
  0x30   : > { %v229_v23 = vadd.f32 %v228_v17, %v200_v13  ;;  %v250_v26 = vadd.f32 %v249_v20, %v201_v14  ;;  %v969_v39 = vld [vmem:[%s883_s30 + $0x88] sm:$0xff]  ;;  %v210_v40 = vmul.f32 %v954_v30, %v954_v30  ;;  %v974_v42 = vld [vmem:[%s883_s30 + $0x90] sm:$0xff]  ;;  %v211_v43 = vmul.f32 %v959_v33, %v959_v33  ;;  %v979_v45 = vld [vmem:[%s883_s30 + $0x98] sm:$0xff] }
  0x31   : > { %v212_v46 = vmul.f32 %v964_v36, %v964_v36  ;;  %v984_v48 = vld [vmem:[%s883_s30 + $0xa0] sm:$0xff]  ;;  %v213_v49 = vmul.f32 %v969_v39, %v969_v39  ;;  %v989_v51 = vld [vmem:[%s883_s30 + $0xa8] sm:$0xff]  ;;  %v214_v52 = vmul.f32 %v974_v42, %v974_v42  ;;  %v994_v54 = vld [vmem:[%s883_s30 + $0xb0] sm:$0xff]  ;;  %v215_v55 = vmul.f32 %v979_v45, %v979_v45 }
  0x32   : > { %v230_v29 = vadd.f32 %v229_v23, %v202_v16  ;;  %v251_v32 = vadd.f32 %v250_v26, %v203_v19  ;;  %v999_v57 = vld [vmem:[%s883_s30 + $0xb8] sm:$0xff]  ;;  %v216_v58 = vmul.f32 %v984_v48, %v984_v48  ;;  %v1004_v60 = vld [vmem:[%s883_s30 + $0xc0] sm:$0xff]  ;;  %v217_v61 = vmul.f32 %v989_v51, %v989_v51  ;;  %v1009_v63 = vld [vmem:[%s883_s30 + $0xc8] sm:$0xff] }
  0x33   : > { %v218_v6 = vmul.f32 %v994_v54, %v994_v54  ;;  %v1014_v8 = vld [vmem:[%s883_s30 + $0xd0] sm:$0xff]  ;;  %v219_v12 = vmul.f32 %v999_v57, %v999_v57  ;;  %v1019_v14 = vld [vmem:[%s883_s30 + $0xd8] sm:$0xff]  ;;  %v220_v16 = vmul.f32 %v1004_v60, %v1004_v60  ;;  %v1024_v19 = vld [vmem:[%s883_s30 + $0xe0] sm:$0xff]  ;;  %v221_v20 = vmul.f32 %v1009_v63, %v1009_v63 }
  0x34   : > { %v231_v35 = vadd.f32 %v230_v29, %v204_v22  ;;  %v252_v38 = vadd.f32 %v251_v32, %v205_v25  ;;  %v1029_v23 = vld [vmem:[%s883_s30 + $0xe8] sm:$0xff]  ;;  %v222_v25 = vmul.f32 %v1014_v8, %v1014_v8  ;;  %v223_v29 = vmul.f32 %v1019_v14, %v1019_v14  ;;  %v1039_v32 = vld [vmem:[%s883_s30 + $0xf8] sm:$0xff] }
  0x36   : > { %v232_v41 = vadd.f32 %v231_v35, %v206_v28  ;;  %v253_v44 = vadd.f32 %v252_v38, %v207_v31  ;;  %v1034_v28 = vld [vmem:[%s883_s30 + $0xf0] sm:$0xff] }
  0x38   : > { %v233_v47 = vadd.f32 %v232_v41, %v208_v34  ;;  %v254_v50 = vadd.f32 %v253_v44, %v209_v37  ;;  %v224_v34 = vmul.f32 %v1024_v19, %v1024_v19  ;;  %v225_v37 = vmul.f32 %v1029_v23, %v1029_v23 }
  0x3a   : > { %v234_v53 = vadd.f32 %v233_v47, %v210_v40  ;;  %v255_v56 = vadd.f32 %v254_v50, %v211_v43  ;;  %v226_v40 = vmul.f32 %v1034_v28, %v1034_v28  ;;  %v227_v43 = vmul.f32 %v1039_v32, %v1039_v32 }
  0x3c   : > { %v235_v59 = vadd.f32 %v234_v53, %v212_v46  ;;  %v256_v62 = vadd.f32 %v255_v56, %v213_v49 }
  0x3e   : > { %v236_v7 = vadd.f32 %v235_v59, %v214_v52  ;;  %v257_v13 = vadd.f32 %v256_v62, %v215_v55 }
  0x40   : > { %v237_v17 = vadd.f32 %v236_v7, %v216_v58  ;;  %v258_v22 = vadd.f32 %v257_v13, %v217_v61 }
  0x42   : > { %v238_v26 = vadd.f32 %v237_v17, %v218_v6  ;;  %v259_v31 = vadd.f32 %v258_v22, %v219_v12 }
  0x44   : > { %v239_v35 = vadd.f32 %v238_v26, %v220_v16  ;;  %v260_v38 = vadd.f32 %v259_v31, %v221_v20 }
  0x46   : > { %v240_v41 = vadd.f32 %v239_v35, %v222_v25  ;;  %v261_v44 = vadd.f32 %v260_v38, %v223_v29 }
  0x48   : > { %v241_v46 = vadd.f32 %v240_v41, %v224_v34  ;;  %v262_v47 = vadd.f32 %v261_v44, %v225_v37 }
  0x4a   : > { %v242_v49 = vadd.f32 %v241_v46, %v226_v40  ;;  %v263_v50 = vadd.f32 %v262_v47, %v227_v43 }
  0x4c   : > { %v243_v52 = vrot.slane %v242_v49, 4  ;;  %v264_v53 = vrot.slane %v263_v50, 4 }
  0x4e   : > { %v244_v55 = vadd.f32 %v243_v52, %v242_v49  ;;  %v265_v56 = vadd.f32 %v264_v53, %v263_v50 }
  0x50   : > { %v245_v58 = vrot.slane %v244_v55, 2  ;;  %v266_v59 = vrot.slane %v265_v56, 2 }
  0x52   : > { %v246_v61 = vadd.f32 %v245_v58, %v244_v55  ;;  %v267_v62 = vadd.f32 %v266_v59, %v265_v56 }
  0x54   : > { %v247_v6 = vrot.slane %v246_v61, 1  ;;  %v268_v7 = vrot.slane %v267_v62, 1 }
  0x56   : > { %v248_v12 = vadd.f32 %v247_v6, %v246_v61  ;;  %v269_v13 = vadd.f32 %v268_v7, %v267_v62 }
  0x58   : > { %v270_v16 = vmax.f32 %v248_v12, 1e-24  ;;  %v271_v17 = vmax.f32 %v269_v13, 1e-24 }
  0x5a   : > { %671 = vrsqrt.f32 %v270_v16  ;;  %vm278_vm0 = vweird.f32 %v270_v16  ;;  %vm288_vm2 = vweird.f32 %v271_v17 }
  0x5b   : > { %673 = vrsqrt.f32 %v271_v17 }
  0x60   : > { %v672_v20 = vpop.eup %671 }
  0x61   : > { %v674_v22 = vpop.eup %673  ;;  %v273_v25 = vmul.f32 %v672_v20, %v270_v16  ;;  %vm279_vm1 = vweird.f32 %v672_v20 }
  0x62   : > { %v283_v26 = vmul.f32 %v674_v22, %v271_v17  ;;  %vm289_vm3 = vweird.f32 %v674_v22  ;;  %vm280_vm4 = vmor %vm278_vm0, %vm279_vm1 }
  0x63   : > { %v274_v29 = vmul.f32 %v672_v20, %v273_v25  ;;  %vm290_vm5 = vmor %vm288_vm2, %vm289_vm3 }
  0x64   : > { %v284_v31 = vmul.f32 %v674_v22, %v283_v26 }
  0x65   : > { %v275_v34 = vmul.f32 0.5, %v274_v29 }
  0x66   : > { %v285_v35 = vmul.f32 0.5, %v284_v31 }
  0x67   : > { %v276_v37 = vsub.f32 1.5, %v275_v34 }
  0x68   : > { %v286_v38 = vsub.f32 1.5, %v285_v35 }
  0x69   : > { %v277_v40 = vmul.f32 %v672_v20, %v276_v37 }
  0x6a   : > { %v287_v41 = vmul.f32 %v674_v22, %v286_v38 }
  0x6b   : > { %v281_v43 = vsel %vm280_vm4, %v672_v20, %v277_v40 }
  0x6c   : > { %v291_v44 = vsel %vm290_vm5, %v674_v22, %v287_v41  ;;  %v292_v46 = vmul.f32 %v281_v43, %v890_v0  ;;  %v294_v47 = vmul.f32 %v281_v43, %v896_v2  ;;  %v296_v49 = vmul.f32 %v281_v43, %v902_v4 }
  0x6d   : > { %v293_v50 = vmul.f32 %v291_v44, %v893_v1  ;;  %v295_v52 = vmul.f32 %v291_v44, %v899_v3  ;;  %v297_v53 = vmul.f32 %v291_v44, %v905_v5  ;;  %v298_v55 = vmul.f32 %v281_v43, %v914_v9 }
  0x6e   : > { %v299_v56 = vmul.f32 %v291_v44, %v917_v10  ;;  %v300_v58 = vmul.f32 %v281_v43, %v920_v11  ;;  %v301_v59 = vmul.f32 %v291_v44, %v929_v15  ;;  %v302_v0 = vmul.f32 %v281_v43, %v934_v18 }
  0x6f   : > { %v1061_v61 = vpack.c.bf16 %v293_v50, %v292_v46  ;;  %v1063_v2 = vpack.c.bf16 %v295_v52, %v294_v47  ;;  %v1065_v4 = vpack.c.bf16 %v297_v53, %v296_v49  ;;  %v303_v1 = vmul.f32 %v291_v44, %v939_v21 }
  0x70   : > { %v1068_v3 = vpack.c.bf16 %v299_v56, %v298_v55  ;;  %v304_v5 = vmul.f32 %v281_v43, %v944_v24  ;;  %v305_v9 = vmul.f32 %v291_v44, %v949_v27  ;;  %v1076_v10 = vpack.c.bf16 %v301_v59, %v300_v58 }
  0x71   : > { %340 = vst [vmem:[%s1072_s29] sm:$0xff] %v1061_v61  ;;  %v306_v11 = vmul.f32 %v281_v43, %v954_v30  ;;  %v307_v15 = vmul.f32 %v291_v44, %v959_v33  ;;  %v308_v18 = vmul.f32 %v281_v43, %v964_v36  ;;  %v1083_v21 = vpack.c.bf16 %v303_v1, %v302_v0 }
  0x72   : > { %341 = vst [vmem:[%s1072_s29 + $0x8] sm:$0xff] %v1063_v2  ;;  %v309_v24 = vmul.f32 %v291_v44, %v969_v39  ;;  %v310_v27 = vmul.f32 %v281_v43, %v974_v42  ;;  %v311_v62 = vmul.f32 %v291_v44, %v979_v45  ;;  %v1090_v30 = vpack.c.bf16 %v305_v9, %v304_v5 }
  0x73   : > { %342 = vst [vmem:[%s1072_s29 + $0x10] sm:$0xff] %v1065_v4  ;;  %v312_v33 = vmul.f32 %v281_v43, %v984_v48  ;;  %v313_v36 = vmul.f32 %v291_v44, %v989_v51  ;;  %v1096_v6 = vpack.c.bf16 %v307_v15, %v306_v11  ;;  %v314_v39 = vmul.f32 %v281_v43, %v994_v54 }
  0x74   : > { %343 = vst [vmem:[%s1072_s29 + $0x18] sm:$0xff] %v1068_v3  ;;  %v315_v42 = vmul.f32 %v291_v44, %v999_v57  ;;  %v1102_v45 = vpack.c.bf16 %v309_v24, %v308_v18  ;;  %v316_v7 = vmul.f32 %v281_v43, %v1004_v60  ;;  %v317_v48 = vmul.f32 %v291_v44, %v1009_v63 }
  0x75   : > { %344 = vst [vmem:[%s1072_s29 + $0x20] sm:$0xff] %v1076_v10  ;;  %v1108_v51 = vpack.c.bf16 %v311_v62, %v310_v27  ;;  %v318_v12 = vmul.f32 %v281_v43, %v1014_v8  ;;  %v319_v54 = vmul.f32 %v291_v44, %v1019_v14  ;;  %v1114_v57 = vpack.c.bf16 %v313_v36, %v312_v33 }
  0x76   : > { %345 = vst [vmem:[%s1072_s29 + $0x28] sm:$0xff] %v1083_v21  ;;  %v320_v60 = vmul.f32 %v281_v43, %v1024_v19  ;;  %v321_v63 = vmul.f32 %v291_v44, %v1029_v23  ;;  %v1120_v13 = vpack.c.bf16 %v315_v42, %v314_v39  ;;  %v322_v8 = vmul.f32 %v281_v43, %v1034_v28 }
  0x77   : > { %346 = vst [vmem:[%s1072_s29 + $0x30] sm:$0xff] %v1090_v30  ;;  %v323_v14 = vmul.f32 %v291_v44, %v1039_v32  ;;  %v1126_v16 = vpack.c.bf16 %v317_v48, %v316_v7  ;;  %v1130_v17 = vpack.c.bf16 %v319_v54, %v318_v12 }
  0x78   : > { %347 = vst [vmem:[%s1072_s29 + $0x38] sm:$0xff] %v1096_v6  ;;  %v1134_v19 = vpack.c.bf16 %v321_v63, %v320_v60 }
  0x79   : > { %348 = vst [vmem:[%s1072_s29 + $0x40] sm:$0xff] %v1102_v45  ;;  %v1138_v23 = vpack.c.bf16 %v323_v14, %v322_v8 }
  0x7a   : > { %349 = vst [vmem:[%s1072_s29 + $0x48] sm:$0xff] %v1108_v51 }
  0x7b   : > { %350 = vst [vmem:[%s1072_s29 + $0x50] sm:$0xff] %v1114_v57 }
  0x7c   : > { %351 = vst [vmem:[%s1072_s29 + $0x58] sm:$0xff] %v1120_v13  ;;  %359 = sbr.rel (%p610_p6) target bundleno = 146 (0x92), region = 32 }
  0x7d   : > { %352 = vst [vmem:[%s1072_s29 + $0x60] sm:$0xff] %v1126_v16 }
  0x7e   : > { %353 = vst [vmem:[%s1072_s29 + $0x68] sm:$0xff] %v1130_v17 }
  0x7f   : > { %354 = vst [vmem:[%s1072_s29 + $0x70] sm:$0xff] %v1134_v19 }
  0x80   : > { %355 = vst [vmem:[%s1072_s29 + $0x78] sm:$0xff] %v1138_v23 }
  0x81   : > { %vm360_vm6 = vcmask 7168   ;;  %v776_v28 = vmov 0.0  }
  0x82   : > { %361 = vst.msk [vmem:[%s1393_s2] sm:$0xff] %vm360_vm6, %v776_v28 }
  0x83   : > { %362 = vst.msk [vmem:[%s1393_s2 + $0x8] sm:$0xff] %vm360_vm6, %v776_v28 }
  0x84   : > { %363 = vst.msk [vmem:[%s1393_s2 + $0x10] sm:$0xff] %vm360_vm6, %v776_v28 }
  0x85   : > { %364 = vst.msk [vmem:[%s1393_s2 + $0x18] sm:$0xff] %vm360_vm6, %v776_v28 }
  0x86   : > { %365 = vst.msk [vmem:[%s1393_s2 + $0x20] sm:$0xff] %vm360_vm6, %v776_v28 }
  0x87   : > { %366 = vst.msk [vmem:[%s1393_s2 + $0x28] sm:$0xff] %vm360_vm6, %v776_v28 }
  0x88   : > { %367 = vst.msk [vmem:[%s1393_s2 + $0x30] sm:$0xff] %vm360_vm6, %v776_v28 }
  0x89   : > { %368 = vst.msk [vmem:[%s1393_s2 + $0x38] sm:$0xff] %vm360_vm6, %v776_v28 }
  0x8a   : > { %369 = vst.msk [vmem:[%s1393_s2 + $0x40] sm:$0xff] %vm360_vm6, %v776_v28 }
  0x8b   : > { %370 = vst.msk [vmem:[%s1393_s2 + $0x48] sm:$0xff] %vm360_vm6, %v776_v28 }
  0x8c   : > { %371 = vst.msk [vmem:[%s1393_s2 + $0x50] sm:$0xff] %vm360_vm6, %v776_v28 }
  0x8d   : > { %372 = vst.msk [vmem:[%s1393_s2 + $0x58] sm:$0xff] %vm360_vm6, %v776_v28 }
  0x8e   : > { %373 = vst.msk [vmem:[%s1393_s2 + $0x60] sm:$0xff] %vm360_vm6, %v776_v28 }
  0x8f   : > { %374 = vst.msk [vmem:[%s1393_s2 + $0x68] sm:$0xff] %vm360_vm6, %v776_v28 }
  0x90   : > { %375 = vst.msk [vmem:[%s1393_s2 + $0x70] sm:$0xff] %vm360_vm6, %v776_v28 }
  0x91   : > { %376 = vst.msk [vmem:[%s1393_s2 + $0x78] sm:$0xff] %vm360_vm6, %v776_v28 }
  0x92 PF: > { %v393_v32 = vunpack.c.l.bf16 %v1061_v61  ;;  %v394_v20 = vunpack.c.h.bf16 %v1061_v61  ;;  %v401_v22 = vunpack.c.l.bf16 %v1076_v10  ;;  %v402_v25 = vunpack.c.h.bf16 %v1076_v10  ;;  %s617_s30 = sshll.u32 %s816_s13, 3  ;;  %s519_s5 = sshll.u32 %s1072_s29, 4  ;;  %s520_s5 = int_to_ptr.vmem [resolvable:$true] %s519_s5 }
  0x93   : > { %v397_v26 = vunpack.c.l.bf16 %v1065_v4  ;;  %v398_v29 = vunpack.c.h.bf16 %v1065_v4  ;;  %v395_v37 = vunpack.c.l.bf16 %v1063_v2  ;;  %v396_v38 = vunpack.c.h.bf16 %v1063_v2  ;;  %s518_s4 = scalar_lea.hbm %s1392_s1, %s617_s30  ;;  %s507_s7 = scalar_lea.sflag [#allocation4], %s879_s26 }
  0x94   : > { %v425_v31 = vadd.f32 %v394_v20, %v393_v32  ;;  %v437_v34 = vadd.f32 %v402_v25, %v401_v22  ;;  %v403_v40 = vunpack.c.l.bf16 %v1083_v21  ;;  %v404_v41 = vunpack.c.h.bf16 %v1083_v21  ;;  %s521_s6 = sshll.u32 %s518_s4, 4  ;;  %s725_s16 = scalar_lea.hbm %s1392_s1, 256  ;;  %s522_s6 = int_to_ptr.hbm [resolvable:$true] %s521_s6 }
  0x95   : > { %v431_v35 = vadd.f32 %v398_v29, %v397_v26  ;;  %v399_v43 = vunpack.c.l.bf16 %v1068_v3  ;;  %v400_v44 = vunpack.c.h.bf16 %v1068_v3  ;;  %v428_v46 = vadd.f32 %v396_v38, %v395_v37  ;;  %s719_s13 = sshra.s32 %s522_s6, 4  ;;  %s720_s13 = int_to_ptr.hbm [resolvable:$true] %s719_s13 }
  0x96   : > { %426 = vadd.xlane.f32.xlu0 %v425_v31  ;;  %438 = vadd.xlane.f32.xlu2 %v437_v34  ;;  %v440_v47 = vadd.f32 %v404_v41, %v403_v40  ;;  %v405_v50 = vunpack.c.l.bf16 %v1090_v30  ;;  %v406_v52 = vunpack.c.h.bf16 %v1090_v30  ;;  %v409_v53 = vunpack.c.l.bf16 %v1102_v45  ;;  %s721_s8 = scalar_lea.hbm %s720_s13, 128  ;;  %p726_p4 = scmp.lt.s32.totalorder %s720_s13, %s1392_s1 }
  0x97   : > { %432 = vadd.xlane.f32.xlu1 %v431_v35  ;;  %v434_v49 = vadd.f32 %v400_v44, %v399_v43  ;;  %v410_v55 = vunpack.c.h.bf16 %v1102_v45  ;;  %v407_v56 = vunpack.c.l.bf16 %v1096_v6  ;;  %v408_v58 = vunpack.c.h.bf16 %v1096_v6  ;;  %p722_p13 = scmp.ne.s32.totalorder %s720_s13, %s721_s8  ;;  %p727_p5 = scmp.lt.s32.totalorder %s725_s16, %s721_s8 }
  0x98   : > { %v443_v59 = vadd.f32 %v406_v52, %v405_v50  ;;  %v411_v2 = vunpack.c.l.bf16 %v1108_v51  ;;  %v412_v4 = vunpack.c.h.bf16 %v1108_v51  ;;  %v415_v1 = vunpack.c.l.bf16 %v1120_v13 }
  0x99   : > { %v449_v0 = vadd.f32 %v410_v55, %v409_v53  ;;  %v446_v61 = vadd.f32 %v408_v58, %v407_v56  ;;  %v416_v3 = vunpack.c.h.bf16 %v1120_v13  ;;  %v413_v5 = vunpack.c.l.bf16 %v1114_v57  ;;  %p723_p0 = pnand %p722_p13, %p845_p11  ;;  %p728_p7 = por %p727_p5, %p726_p4 }
  0x9a   : > { %v414_v9 = vunpack.c.h.bf16 %v1114_v57  ;;  %v452_v10 = vadd.f32 %v412_v4, %v411_v2  ;;  %v417_v18 = vunpack.c.l.bf16 %v1126_v16  ;;  %v418_v21 = vunpack.c.h.bf16 %v1126_v16 }
  0x9b   : > { %v458_v11 = vadd.f32 %v416_v3, %v415_v1  ;;  %v421_v24 = vunpack.c.l.bf16 %v1134_v19  ;;  %v422_v27 = vunpack.c.h.bf16 %v1134_v19  ;;  %v419_v62 = vunpack.c.l.bf16 %v1130_v17  ;;  %p724_p3 = pneg %p723_p0 }
  0x9c   : > { %v455_v15 = vadd.f32 %v414_v9, %v413_v5  ;;  %v420_v30 = vunpack.c.h.bf16 %v1130_v17  ;;  %v461_v33 = vadd.f32 %v418_v21, %v417_v18  ;;  %v423_v39 = vunpack.c.l.bf16 %v1138_v23 }
  0x9d   : > { %v467_v36 = vadd.f32 %v422_v27, %v421_v24  ;;  %v424_v42 = vunpack.c.h.bf16 %v1138_v23  ;;  %p729_p8 = pnand %p728_p7, %p724_p3 }
  0x9e   : > { %429 = vadd.xlane.f32.xlu0 %v428_v46  ;;  %441 = vadd.xlane.f32.xlu2 %v440_v47  ;;  %v464_v6 = vadd.f32 %v420_v30, %v419_v62 }
  0x9f   : > { %435 = vadd.xlane.f32.xlu1 %v434_v49 }
  0xa6   : > { %444 = vadd.xlane.f32.xlu0 %v443_v59  ;;  %450 = vadd.xlane.f32.xlu2 %v449_v0 }
  0xa7   : > { %447 = vadd.xlane.f32.xlu1 %v446_v61 }
  0xae   : > { %453 = vadd.xlane.f32.xlu0 %v452_v10  ;;  %459 = vadd.xlane.f32.xlu2 %v458_v11 }
  0xaf   : > { %456 = vadd.xlane.f32.xlu1 %v455_v15 }
  0xb6   : > { %462 = vadd.xlane.f32.xlu0 %v461_v33  ;;  %468 = vadd.xlane.f32.xlu2 %v467_v36 }
  0xb7   : > { %732 = shalt.err (!%p729_p8)
}
  0xb8   : > { %s777_s26 = smov 128   ;;  %s778_s23 = smov 256   ;;  %465 = vadd.xlane.f32.xlu1 %v464_v6  ;;  %v470_v45 = vadd.f32 %v424_v42, %v423_v39  ;;  %v377_v7 = vld [vmem:[%s1393_s2] sm:$0xff]  ;;  %v379_v51 = vld [vmem:[%s1393_s2 + $0x10] sm:$0xff]  ;;  %vm489_vm7 = vcmask 7168   ;;  %v378_v8 = vld [vmem:[%s1393_s2 + $0x8] sm:$0xff] }
  0xb9   : > { %s779_s24 = smov 8   ;;  %v381_v48 = vld [vmem:[%s1393_s2 + $0x20] sm:$0xff]  ;;  %v382_v14 = vld [vmem:[%s1393_s2 + $0x28] sm:$0xff]  ;;  %v380_v16 = vld [vmem:[%s1393_s2 + $0x18] sm:$0xff] }
  0xba   : > { %620 = dma.vmem_to_hbm [thread:$0]  (%p845_p11), %s520_s5, 2048, %s522_s6, %s507_s7, %s777_s26, %s778_s23, %s779_s24  }
  0xbb   : > { %v383_v22 = vld [vmem:[%s1393_s2 + $0x30] sm:$0xff]  ;;  %v385_v25 = vld [vmem:[%s1393_s2 + $0x40] sm:$0xff]  ;;  %v384_v26 = vld [vmem:[%s1393_s2 + $0x38] sm:$0xff] }
  0xbc   : > { %v386_v40 = vld [vmem:[%s1393_s2 + $0x48] sm:$0xff]  ;;  %v388_v41 = vld [vmem:[%s1393_s2 + $0x58] sm:$0xff]  ;;  %v387_v43 = vld [vmem:[%s1393_s2 + $0x50] sm:$0xff] }
  0xbd   : > { %v389_v53 = vld [vmem:[%s1393_s2 + $0x60] sm:$0xff]  ;;  %v391_v55 = vld [vmem:[%s1393_s2 + $0x70] sm:$0xff]  ;;  %v390_v56 = vld [vmem:[%s1393_s2 + $0x68] sm:$0xff] }
  0xbe   : > { %471 = vadd.xlane.f32.xlu0 %v470_v45  ;;  %v392_v1 = vld [vmem:[%s1393_s2 + $0x78] sm:$0xff] }
 0x109   : > { %v427_v12 = vpop.xlane.xlu0 %426  ;;  %v439_v54 = vpop.xlane.xlu2 %438 }
 0x10a   : > { %v473_v57 = vadd.f32 %v427_v12, %v377_v7  ;;  %v477_v60 = vadd.f32 %v439_v54, %v381_v48  ;;  %v433_v63 = vpop.xlane.xlu1 %432 }
 0x10b   : > { %v475_v13 = vadd.f32 %v433_v63, %v379_v51 }
 0x10c   : > { %490 = vst.msk [vmem:[%s1393_s2] sm:$0xff] %vm489_vm7, %v473_v57 }
 0x10d   : > { %494 = vst.msk [vmem:[%s1393_s2 + $0x20] sm:$0xff] %vm489_vm7, %v477_v60 }
 0x10e   : > { %492 = vst.msk [vmem:[%s1393_s2 + $0x10] sm:$0xff] %vm489_vm7, %v475_v13 }
 0x111   : > { %v430_v17 = vpop.xlane.xlu0 %429  ;;  %v442_v19 = vpop.xlane.xlu2 %441 }
 0x112   : > { %v474_v23 = vadd.f32 %v430_v17, %v378_v8  ;;  %v478_v28 = vadd.f32 %v442_v19, %v382_v14  ;;  %v436_v32 = vpop.xlane.xlu1 %435 }
 0x113   : > { %v476_v20 = vadd.f32 %v436_v32, %v380_v16 }
 0x114   : > { %491 = vst.msk [vmem:[%s1393_s2 + $0x8] sm:$0xff] %vm489_vm7, %v474_v23 }
 0x115   : > { %495 = vst.msk [vmem:[%s1393_s2 + $0x28] sm:$0xff] %vm489_vm7, %v478_v28 }
 0x116   : > { %493 = vst.msk [vmem:[%s1393_s2 + $0x18] sm:$0xff] %vm489_vm7, %v476_v20 }
 0x119   : > { %v445_v29 = vpop.xlane.xlu0 %444  ;;  %v451_v31 = vpop.xlane.xlu2 %450 }
 0x11a   : > { %v479_v34 = vadd.f32 %v445_v29, %v383_v22  ;;  %v481_v35 = vadd.f32 %v451_v31, %v385_v25  ;;  %v448_v37 = vpop.xlane.xlu1 %447 }
 0x11b   : > { %v480_v38 = vadd.f32 %v448_v37, %v384_v26 }
 0x11c   : > { %496 = vst.msk [vmem:[%s1393_s2 + $0x30] sm:$0xff] %vm489_vm7, %v479_v34 }
 0x11d   : > { %498 = vst.msk [vmem:[%s1393_s2 + $0x40] sm:$0xff] %vm489_vm7, %v481_v35 }
 0x11e   : > { %497 = vst.msk [vmem:[%s1393_s2 + $0x38] sm:$0xff] %vm489_vm7, %v480_v38 }
 0x121   : > { %v454_v44 = vpop.xlane.xlu0 %453  ;;  %v460_v46 = vpop.xlane.xlu2 %459 }
 0x122   : > { %v482_v47 = vadd.f32 %v454_v44, %v386_v40  ;;  %v484_v49 = vadd.f32 %v460_v46, %v388_v41  ;;  %v457_v50 = vpop.xlane.xlu1 %456 }
 0x123   : > { %v483_v52 = vadd.f32 %v457_v50, %v387_v43 }
 0x124   : > { %499 = vst.msk [vmem:[%s1393_s2 + $0x48] sm:$0xff] %vm489_vm7, %v482_v47 }
 0x125   : > { %501 = vst.msk [vmem:[%s1393_s2 + $0x58] sm:$0xff] %vm489_vm7, %v484_v49 }
 0x126   : > { %500 = vst.msk [vmem:[%s1393_s2 + $0x50] sm:$0xff] %vm489_vm7, %v483_v52 }
 0x129   : > { %v463_v58 = vpop.xlane.xlu0 %462  ;;  %v469_v59 = vpop.xlane.xlu2 %468 }
 0x12a   : > { %v485_v0 = vadd.f32 %v463_v58, %v389_v53  ;;  %v487_v61 = vadd.f32 %v469_v59, %v391_v55 }
 0x12b   : > { %v466_v2 = vpop.xlane.xlu1 %465 }
 0x12c   : > { %v486_v4 = vadd.f32 %v466_v2, %v390_v56  ;;  %502 = vst.msk [vmem:[%s1393_s2 + $0x60] sm:$0xff] %vm489_vm7, %v485_v0 }
 0x12d   : > { %504 = vst.msk [vmem:[%s1393_s2 + $0x70] sm:$0xff] %vm489_vm7, %v487_v61 }
 0x12e   : > { %503 = vst.msk [vmem:[%s1393_s2 + $0x68] sm:$0xff] %vm489_vm7, %v486_v4 }
 0x131   : > { %v472_v3 = vpop.xlane.xlu0 %471 }
 0x132   : > { %v488_v5 = vadd.f32 %v472_v3, %v392_v1 }
 0x134   : > { %505 = vst.msk [vmem:[%s1393_s2 + $0x78] sm:$0xff] %vm489_vm7, %v488_v5 }
 0x135 PF: > { %s542_s27 = sand.u32 1, %s759_s9   ;;  %p627_p11 = pnand %p603_p9, %p849_p12 }
 0x136   : > { %s543_s28 = scalar_lea.sflag [#allocation4], %s542_s27 }
 0x137   : > { %p628_p10 = pneg %p627_p11 }
 0x139   : > { %754 = dma.done.wait (%p628_p10), %s543_s28, 2048  }
 0x13a   : > { %756 = vsyncadd (%p628_p10), %s543_s28, 4294965248  ;;  %p16_p1 = scmp.ge.s32.totalorder %s820_s15, 4   ;;  %s1399_s9 = smov %s763_s10 }
 0x13b   : > { %s1400_s10 = smov %s767_s11  ;;  %s1401_s11 = smov %s832_s18 }
 0x13c   : > { %s1402_s12 = smov %s820_s15  ;;  %18 = sbr.rel (!%p16_p1) target bundleno = 5 (0x5), region = 81 }
 0x141   :  { %549 = vsyncpa [#allocation3], 1 }
 0x142   :  { %551 = vsyncpa [#allocation3 + $0x1], 1 }
 0x143   :  { %552 = vsyncpa [#allocation4], 1 }
 0x144   :  { %554 = vsyncpa [#allocation4 + $0x1], 1 }

</bundles_post_ra>
